<compile_context>
chip_gen: v5e
topology: v5e:2x2
jax: 0.10.0
libtpu: 0.0.40
codegen_flags: <defaults>
</compile_context>

<pallas_src>
import jax
import jax.numpy as jnp
from jax.experimental import pallas as pl
from jax.experimental.pallas import tpu as pltpu

LANE = 128  # TPU lane width


def transition_mlp_kernel(s_ref, a_ref,
                          w1s_ref, w1a_ref, b1_ref,
                          w2_ref, b2_ref,
                          w3_ref, b3_ref,
                          o_ref):
    """One batch tile of the fused 3-layer MLP.

    s_ref: [TILE_B, obs_dim]   bf16
    a_ref: [TILE_B, act_dim]   bf16
    w*_ref: bf16 weights (padded to 128-lane feature dims), b*_ref: f32 biases
    o_ref: [TILE_B, OBS_PAD]   f32
    """
    # Layer 1: split matmul replaces concat([s, a]) @ w1.
    h1 = jnp.dot(s_ref[...], w1s_ref[...], preferred_element_type=jnp.float32)
    h1 = h1 + jnp.dot(a_ref[...], w1a_ref[...], preferred_element_type=jnp.float32)
    h1 = jnp.maximum(h1 + b1_ref[...], 0.0)                 # bias + ReLU in f32 (VPU)
    h1 = h1.astype(jnp.bfloat16)

    # Layer 2
    h2 = jnp.dot(h1, w2_ref[...], preferred_element_type=jnp.float32)
    h2 = jnp.maximum(h2 + b2_ref[...], 0.0)
    h2 = h2.astype(jnp.bfloat16)

    # Layer 3 (no activation)
    out = jnp.dot(h2, w3_ref[...], preferred_element_type=jnp.float32) + b3_ref[...]
    o_ref[...] = out.astype(o_ref.dtype)                    # lane-dense store


def init_transition_params(key, obs_dim, act_dim, hidden_dim):
    """Mirror weight_init(): orthogonal Linear weights (gain=1.0), zero biases.
    Stored transposed ([in, out]) relative to PyTorch ([out, in])."""
    in_dim = obs_dim + act_dim
    ortho = jax.nn.initializers.orthogonal(scale=1.0)
    k1, k2, k3 = jax.random.split(key, 3)
    w1 = ortho(k1, (hidden_dim, in_dim), jnp.float32).T      # [in, hidden]
    b1 = jnp.zeros((1, hidden_dim), jnp.float32)
    w2 = ortho(k2, (hidden_dim, hidden_dim), jnp.float32).T  # [hidden, hidden]
    b2 = jnp.zeros((1, hidden_dim), jnp.float32)
    w3 = ortho(k3, (obs_dim, hidden_dim), jnp.float32).T     # [hidden, obs]
    b3 = jnp.zeros((1, obs_dim), jnp.float32)
    return ((w1, b1), (w2, b2), (w3, b3))


def _round_up(n, m):
    return ((n + m - 1) // m) * m


def prepare_padded_params(params, obs_dim, act_dim, hidden_dim):
    """One-time param prep: split w1 into (state, action) halves, zero-pad the
    hidden/output feature dims to 128 lanes, cast weights to bf16 (biases f32)."""
    (w1, b1), (w2, b2), (w3, b3) = params
    h_pad = _round_up(hidden_dim, LANE)
    o_pad = _round_up(obs_dim, LANE)

    def pad_to(x, rows, cols):
        return jnp.pad(x, ((0, rows - x.shape[0]), (0, cols - x.shape[1])))

    w1s = pad_to(w1[:obs_dim, :], obs_dim, h_pad).astype(jnp.bfloat16)   # [obs, H_pad]
    w1a = pad_to(w1[obs_dim:, :], act_dim, h_pad).astype(jnp.bfloat16)   # [act, H_pad]
    b1p = pad_to(b1, 1, h_pad)                                           # f32
    w2p = pad_to(w2, h_pad, h_pad).astype(jnp.bfloat16)                  # [H_pad, H_pad]
    b2p = pad_to(b2, 1, h_pad)
    w3p = pad_to(w3, h_pad, o_pad).astype(jnp.bfloat16)                  # [H_pad, O_pad]
    b3p = pad_to(b3, 1, o_pad)
    return (w1s, w1a, b1p, w2p, b2p, w3p, b3p), o_pad


def transition_net_forward(state, action, padded_params, obs_dim, tile_b=128):
    """Batch-tiled fused forward.  state: [B, obs_dim] f32, action: [B, act_dim] f32."""
    w1s, w1a, b1p, w2p, b2p, w3p, b3p = padded_params
    B = state.shape[0]
    act_dim = action.shape[1]
    o_pad = w3p.shape[1]

    # Batch tile: multiple of 8 sublanes; cap keeps double-buffered tiles well
    # under the v7x 32 MiB scoped-VMEM default (cap higher on v5e/v6e if needed).
    tile_b = max(8, min(tile_b, _round_up(B, 8)))
    b_pad = _round_up(B, tile_b)
    if b_pad != B:
        state = jnp.pad(state, ((0, b_pad - B), (0, 0)))
        action = jnp.pad(action, ((0, b_pad - B), (0, 0)))

    # Halve activation DMA bytes; MXU is bf16-native on v6e/v7x.
    state_bf = state.astype(jnp.bfloat16)
    action_bf = action.astype(jnp.bfloat16)

    resident = lambda arr: pl.BlockSpec(arr.shape, lambda i: (0, 0))  # stays in VMEM

    out_padded = pl.pallas_call(
        transition_mlp_kernel,
        out_shape=jax.ShapeDtypeStruct((b_pad, o_pad), jnp.float32),
        grid=(b_pad // tile_b,),
        in_specs=[
            pl.BlockSpec((tile_b, obs_dim), lambda i: (i, 0)),   # state tile
            pl.BlockSpec((tile_b, act_dim), lambda i: (i, 0)),   # action tile
            resident(w1s), resident(w1a), resident(b1p),
            resident(w2p), resident(b2p),
            resident(w3p), resident(b3p),
        ],
        out_specs=pl.BlockSpec((tile_b, o_pad), lambda i: (i, 0)),
        compiler_params=pltpu.CompilerParams(
            dimension_semantics=("parallel",)),                  # 2 TCs on v7x
    )(state_bf, action_bf, w1s, w1a, b1p, w2p, b2p, w3p, b3p)

    return out_padded[:B, :obs_dim]


def reference_forward_f32(state, action, params):
    """Pure-JAX f32 reference (matches the PyTorch module exactly)."""
    (w1, b1), (w2, b2), (w3, b3) = params
    x = jnp.concatenate([state, action], axis=1)
    h1 = jax.nn.relu(x @ w1 + b1)
    h2 = jax.nn.relu(h1 @ w2 + b2)
    return h2 @ w3 + b3


def reference_forward_matched(state, action, padded_params, obs_dim):
    """Pure-JAX reference with the same bf16-input / f32-accumulate numerics
    as the kernel, for a tight correctness check."""
    w1s, w1a, b1p, w2p, b2p, w3p, b3p = padded_params
    s = state.astype(jnp.bfloat16)
    a = action.astype(jnp.bfloat16)
    h1 = jnp.dot(s, w1s, preferred_element_type=jnp.float32) \
        + jnp.dot(a, w1a, preferred_element_type=jnp.float32)
    h1 = jnp.maximum(h1 + b1p, 0.0).astype(jnp.bfloat16)
    h2 = jnp.maximum(jnp.dot(h1, w2p, preferred_element_type=jnp.float32) + b2p,
                     0.0).astype(jnp.bfloat16)
    out = jnp.dot(h2, w3p, preferred_element_type=jnp.float32) + b3p
    return out[:, :obs_dim]


if __name__ == "__main__":
    # Flat observation + flat action, small hidden width; batch large enough to
    # exercise the batch grid (grid=(2,)) while staying tiny.
    batch, obs_dim, act_dim, hidden_dim = 256, 16, 4, 32

    key = jax.random.PRNGKey(0)
    k_state, k_action, k_params = jax.random.split(key, 3)

    state = jax.random.normal(k_state, (batch, obs_dim), jnp.float32)
    action = jax.random.normal(k_action, (batch, act_dim), jnp.float32)

    params = init_transition_params(k_params, obs_dim, act_dim, hidden_dim)
    padded_params, _ = prepare_padded_params(params, obs_dim, act_dim, hidden_dim)

    out = transition_net_forward(state, action, padded_params, obs_dim, tile_b=128)
    out = jax.block_until_ready(out)

    ref_matched = reference_forward_matched(state, action, padded_params, obs_dim)
    ref_f32 = reference_forward_f32(state, action, params)

    assert out.shape == (batch, obs_dim)
    # Tight check vs. same-numerics reference (bf16 inputs, f32 accumulation).
    assert jnp.allclose(out, ref_matched, atol=2e-3, rtol=2e-3), \
        "mismatch vs bf16-matched JAX reference"
    # Loose sanity check vs. exact f32 reference (bf16 quantization error only).
    assert jnp.allclose(out, ref_f32, atol=1e-1, rtol=1e-1), \
        "mismatch vs f32 JAX reference"

    print("KERNEL_OK")
</pallas_src>

<mosaic_0001>
module attributes {stable_mosaic.version = 11 : i64} {
  func.func @transition_mlp_kernel(%arg0: i32, %arg1: memref<128x16xbf16, #tpu.memory_space<vmem>>, %arg2: memref<128x4xbf16, #tpu.memory_space<vmem>>, %arg3: memref<16x128xbf16, #tpu.memory_space<vmem>>, %arg4: memref<4x128xbf16, #tpu.memory_space<vmem>>, %arg5: memref<1x128xf32, #tpu.memory_space<vmem>>, %arg6: memref<128x128xbf16, #tpu.memory_space<vmem>>, %arg7: memref<1x128xf32, #tpu.memory_space<vmem>>, %arg8: memref<128x128xbf16, #tpu.memory_space<vmem>>, %arg9: memref<1x128xf32, #tpu.memory_space<vmem>>, %arg10: memref<128x128xf32, #tpu.memory_space<vmem>>) attributes {dimension_semantics = [#tpu.dimension_semantics<parallel>], iteration_bounds = array<i64: 2>, scalar_prefetch = 0 : i64, scratch_operands = 0 : i64, tpu.core_type = #tpu.core_type<tc>, window_params = [{transform_indices = @transform_0, window_bounds = array<i64: 128, 16>}, {transform_indices = @transform_1, window_bounds = array<i64: 128, 4>}, {pipeline_mode = #tpu.pipeline_mode<synchronous>, transform_indices = @transform_2, window_bounds = array<i64: 16, 128>}, {pipeline_mode = #tpu.pipeline_mode<synchronous>, transform_indices = @transform_3, window_bounds = array<i64: 4, 128>}, {pipeline_mode = #tpu.pipeline_mode<synchronous>, transform_indices = @transform_4, window_bounds = array<i64: 1, 128>}, {pipeline_mode = #tpu.pipeline_mode<synchronous>, transform_indices = @transform_5, window_bounds = array<i64: 128, 128>}, {pipeline_mode = #tpu.pipeline_mode<synchronous>, transform_indices = @transform_6, window_bounds = array<i64: 1, 128>}, {pipeline_mode = #tpu.pipeline_mode<synchronous>, transform_indices = @transform_7, window_bounds = array<i64: 128, 128>}, {pipeline_mode = #tpu.pipeline_mode<synchronous>, transform_indices = @transform_8, window_bounds = array<i64: 1, 128>}, {transform_indices = @transform_9, window_bounds = array<i64: 128, 128>}]} {
    %c0 = arith.constant 0 : index
    %c0_0 = arith.constant 0 : index
    %0 = vector.load %arg1[%c0, %c0_0] : memref<128x16xbf16, #tpu.memory_space<vmem>>, vector<128x16xbf16>
    %c0_1 = arith.constant 0 : index
    %c0_2 = arith.constant 0 : index
    %1 = vector.load %arg3[%c0_1, %c0_2] : memref<16x128xbf16, #tpu.memory_space<vmem>>, vector<16x128xbf16>
    %cst = arith.constant dense<0.000000e+00> : vector<128x128xf32>
    %2 = tpu.matmul %0, %1, %cst {dimension_numbers = #tpu.dot_dimension_numbers<[1], [0], [0], [1], [0, 0, 1, 1], [], []>} : vector<128x16xbf16>, vector<16x128xbf16>, vector<128x128xf32> -> vector<128x128xf32>
    %c0_3 = arith.constant 0 : index
    %c0_4 = arith.constant 0 : index
    %3 = vector.load %arg2[%c0_3, %c0_4] : memref<128x4xbf16, #tpu.memory_space<vmem>>, vector<128x4xbf16>
    %c0_5 = arith.constant 0 : index
    %c0_6 = arith.constant 0 : index
    %4 = vector.load %arg4[%c0_5, %c0_6] : memref<4x128xbf16, #tpu.memory_space<vmem>>, vector<4x128xbf16>
    %cst_7 = arith.constant dense<0.000000e+00> : vector<128x128xf32>
    %5 = tpu.matmul %3, %4, %cst_7 {dimension_numbers = #tpu.dot_dimension_numbers<[1], [0], [0], [1], [0, 0, 1, 1], [], []>} : vector<128x4xbf16>, vector<4x128xbf16>, vector<128x128xf32> -> vector<128x128xf32>
    %6 = arith.addf %2, %5 : vector<128x128xf32>
    %c0_8 = arith.constant 0 : index
    %c0_9 = arith.constant 0 : index
    %7 = vector.load %arg5[%c0_8, %c0_9] : memref<1x128xf32, #tpu.memory_space<vmem>>, vector<1x128xf32>
    %8 = vector.broadcast %7 : vector<1x128xf32> to vector<128x128xf32>
    %9 = arith.addf %6, %8 : vector<128x128xf32>
    %cst_10 = arith.constant 0.000000e+00 : f32
    %10 = vector.broadcast %cst_10 : f32 to vector<128x128xf32>
    %11 = arith.maximumf %9, %10 : vector<128x128xf32>
    %12 = arith.truncf %11 : vector<128x128xf32> to vector<128x128xbf16>
    %c0_11 = arith.constant 0 : index
    %c0_12 = arith.constant 0 : index
    %13 = vector.load %arg6[%c0_11, %c0_12] : memref<128x128xbf16, #tpu.memory_space<vmem>>, vector<128x128xbf16>
    %cst_13 = arith.constant dense<0.000000e+00> : vector<128x128xf32>
    %14 = tpu.matmul %12, %13, %cst_13 {dimension_numbers = #tpu.dot_dimension_numbers<[1], [0], [0], [1], [0, 0, 1, 1], [], []>} : vector<128x128xbf16>, vector<128x128xbf16>, vector<128x128xf32> -> vector<128x128xf32>
    %c0_14 = arith.constant 0 : index
    %c0_15 = arith.constant 0 : index
    %15 = vector.load %arg7[%c0_14, %c0_15] : memref<1x128xf32, #tpu.memory_space<vmem>>, vector<1x128xf32>
    %16 = vector.broadcast %15 : vector<1x128xf32> to vector<128x128xf32>
    %17 = arith.addf %14, %16 : vector<128x128xf32>
    %cst_16 = arith.constant 0.000000e+00 : f32
    %18 = vector.broadcast %cst_16 : f32 to vector<128x128xf32>
    %19 = arith.maximumf %17, %18 : vector<128x128xf32>
    %20 = arith.truncf %19 : vector<128x128xf32> to vector<128x128xbf16>
    %c0_17 = arith.constant 0 : index
    %c0_18 = arith.constant 0 : index
    %21 = vector.load %arg8[%c0_17, %c0_18] : memref<128x128xbf16, #tpu.memory_space<vmem>>, vector<128x128xbf16>
    %cst_19 = arith.constant dense<0.000000e+00> : vector<128x128xf32>
    %22 = tpu.matmul %20, %21, %cst_19 {dimension_numbers = #tpu.dot_dimension_numbers<[1], [0], [0], [1], [0, 0, 1, 1], [], []>} : vector<128x128xbf16>, vector<128x128xbf16>, vector<128x128xf32> -> vector<128x128xf32>
    %c0_20 = arith.constant 0 : index
    %c0_21 = arith.constant 0 : index
    %23 = vector.load %arg9[%c0_20, %c0_21] : memref<1x128xf32, #tpu.memory_space<vmem>>, vector<1x128xf32>
    %24 = vector.broadcast %23 : vector<1x128xf32> to vector<128x128xf32>
    %25 = arith.addf %22, %24 : vector<128x128xf32>
    %c0_22 = arith.constant 0 : index
    %c0_23 = arith.constant 0 : index
    %26 = vector.load %arg10[%c0_22, %c0_23] : memref<128x128xf32, #tpu.memory_space<vmem>>, vector<128x128xf32>
    tpu.vector_store %arg10[%c0_22, %c0_23], %25 {strides = array<i32>} : memref<128x128xf32, #tpu.memory_space<vmem>>, vector<128x128xf32>,
    return
  }
  func.func @transform_0(%arg0: i32) -> (i32, i32) {
    %c0_i32 = arith.constant 0 : i32
    %c0_i32_0 = arith.constant 0 : i32
    return %arg0, %c0_i32 : i32, i32
  }
  func.func @transform_1(%arg0: i32) -> (i32, i32) {
    %c0_i32 = arith.constant 0 : i32
    %c0_i32_0 = arith.constant 0 : i32
    return %arg0, %c0_i32 : i32, i32
  }
  func.func @transform_2(%arg0: i32) -> (i32, i32) {
    %c0_i32 = arith.constant 0 : i32
    %c0_i32_0 = arith.constant 0 : i32
    %c0_i32_1 = arith.constant 0 : i32
    return %c0_i32, %c0_i32_0 : i32, i32
  }
  func.func @transform_3(%arg0: i32) -> (i32, i32) {
    %c0_i32 = arith.constant 0 : i32
    %c0_i32_0 = arith.constant 0 : i32
    %c0_i32_1 = arith.constant 0 : i32
    return %c0_i32, %c0_i32_0 : i32, i32
  }
  func.func @transform_4(%arg0: i32) -> (i32, i32) {
    %c0_i32 = arith.constant 0 : i32
    %c0_i32_0 = arith.constant 0 : i32
    %c0_i32_1 = arith.constant 0 : i32
    return %c0_i32, %c0_i32_0 : i32, i32
  }
  func.func @transform_5(%arg0: i32) -> (i32, i32) {
    %c0_i32 = arith.constant 0 : i32
    %c0_i32_0 = arith.constant 0 : i32
    %c0_i32_1 = arith.constant 0 : i32
    return %c0_i32, %c0_i32_0 : i32, i32
  }
  func.func @transform_6(%arg0: i32) -> (i32, i32) {
    %c0_i32 = arith.constant 0 : i32
    %c0_i32_0 = arith.constant 0 : i32
    %c0_i32_1 = arith.constant 0 : i32
    return %c0_i32, %c0_i32_0 : i32, i32
  }
  func.func @transform_7(%arg0: i32) -> (i32, i32) {
    %c0_i32 = arith.constant 0 : i32
    %c0_i32_0 = arith.constant 0 : i32
    %c0_i32_1 = arith.constant 0 : i32
    return %c0_i32, %c0_i32_0 : i32, i32
  }
  func.func @transform_8(%arg0: i32) -> (i32, i32) {
    %c0_i32 = arith.constant 0 : i32
    %c0_i32_0 = arith.constant 0 : i32
    %c0_i32_1 = arith.constant 0 : i32
    return %c0_i32, %c0_i32_0 : i32, i32
  }
  func.func @transform_9(%arg0: i32) -> (i32, i32) {
    %c0_i32 = arith.constant 0 : i32
    %c0_i32_0 = arith.constant 0 : i32
    return %arg0, %c0_i32 : i32, i32
  }
}

</mosaic_0001>

<bundles_post_ra>
// kernel: tpu_custom_call.1
= control target key start
LH: loop header
LB: loop body
LE: loop exit
PB: predicated region body
PF: predicated region fallthrough
CT: control target
= control target key end

     0   :  { %14 = vsyncpa [#allocation3], 0  ;;  %s1621_s0 = inlined_call_operand.vmem [shape: bf16[256,16], index: 0, kind: input, shape index: {}]   ;;  %s1622_s1 = inlined_call_operand.vmem [shape: bf16[256,4], index: 1, kind: input, shape index: {}]   ;;  %s1623_s2 = inlined_call_operand.vmem [shape: bf16[16,128], index: 2, kind: input, shape index: {}]   ;;  %s1624_s3 = inlined_call_operand.vmem [shape: bf16[4,128], index: 3, kind: input, shape index: {}]   ;;  %s1625_s4 = inlined_call_operand.vmem [shape: f32[1,128], index: 4, kind: input, shape index: {}]   ;;  %s1626_s5 = inlined_call_operand.vmem [shape: bf16[128,128], index: 5, kind: input, shape index: {}]   ;;  %s1627_s6 = inlined_call_operand.vmem [shape: f32[1,128], index: 6, kind: input, shape index: {}]   ;;  %s1628_s7 = inlined_call_operand.vmem [shape: bf16[128,128], index: 7, kind: input, shape index: {}]   ;;  %s1629_s8 = inlined_call_operand.vmem [shape: f32[1,128], index: 8, kind: input, shape index: {}]   ;;  %s1630_s9 = inlined_call_operand.hbm [shape: f32[256,128], index: 9, kind: output, shape index: {}]  }
   0x1   :  { %16 = vsyncpa [#allocation3 + $0x1], 0  ;;  %s1394_s30 = smov 0   ;;  %s1396_s10 = smov 0  }
   0x2   :  { %s1398_s11 = smov 0   ;;  %s1400_s12 = smov 0  }
   0x3 LB: > { %s1415_s13 = sadd.s32 4294967295, %s1340_s12   ;;  %s1038_s14 = sadd.s32 4294967294, %s1340_s12   ;;  %s1340_s12 = sphi %s1400_s12, %s1636_s12   ;;  %s1336_s11 = sphi %s1398_s11, %s1635_s11   ;;  %s1332_s10 = sphi %s1396_s10, %s1634_s10   ;;  %s1328_s30 = sphi %s1394_s30, %s1633_s30  }
   0x4   : > { %s1419_s15 = sadd.s32 1, %s1340_s12   ;;  %s228_s16 = sadd.s32 1, %s1336_s11 }
   0x5   : > { %s225_s17 = ssub.s32 %s1340_s12, %s1419_s15  ;;  %p238_p0 = scmp.ne.s32.totalorder %s1336_s11, %s1332_s10 }
   0x6   : > { %p226_p1 = scmp.eq.s32.totalorder %s225_s17, 0  ;;  %p239_p2 = scmp.eq.s32.totalorder %s1415_s13, 1 }
   0x7   : > { %p244_p3 = scmp.ne.s32.totalorder %s1332_s10, %s1328_s30  ;;  %p245_p4 = scmp.eq.s32.totalorder %s1038_s14, 1 }
   0x8   : > { %s1430_s18 = scalar_select %p226_p1, %s1336_s11, %s228_s16  }
   0x9   : > { %p1432_p5 = por %p239_p2, %p238_p0  ;;  %p1436_p6 = por %p245_p4, %p244_p3 }
   0xa   : > { %p1041_p7 = scmp.ge.s32.totalorder %s1340_s12, 1  ;;  %p302_p8 = scmp.lt.s32.totalorder %s1340_s12, 3 }
   0xc   : > { %p303_p9 = pnand %p1041_p7, %p302_p8 }
   0xd   : > { %s1043_s25 = sshll.u32 (!%p303_p9), %s1415_s13, 4  ;;  %s340_s23 = sand.u32 (!%p303_p9), 1, %s1332_s10  }
   0xe   : > { %306 = sbr.rel (%p303_p9) target bundleno = 570 (0x23a), region = 56  ;;  %p344_p10 = scmp.lt.s32.totalorder (!%p303_p9), %s1043_s25, 31 }
   0xf   : > { %s1042_s24 = sshll.u32 (!%p303_p9), %s340_s23, 7  ;;  %s1233_s28 = sshll.u32 (!%p303_p9), %s1415_s13, 7 }
  0x10   : > { %s1569_s27 = scalar_lea.vmem (!%p303_p9), [#allocation2], %s1042_s24  ;;  %s960_s14 = scalar_lea.hbm (!%p303_p9), %s1630_s9, %s1233_s28 }
  0x11   : > { %s961_s16 = sshll.u32 (!%p303_p9), %s1569_s27, 4  ;;  %s963_s21 = sshll.u32 (!%p303_p9), %s960_s14, 4  ;;  %s962_s16 = int_to_ptr.vmem [resolvable:$true] %s961_s16  ;;  %s964_s21 = int_to_ptr.hbm [resolvable:$true] %s963_s21 }
  0x12   : > { %s949_s22 = scalar_lea.sflag (!%p303_p9), [#allocation3], %s340_s23  ;;  %s1292_s24 = sshra.s32 (!%p303_p9), %s964_s21, 4  ;;  %s1293_s24 = int_to_ptr.hbm [resolvable:$true] %s1292_s24 }
  0x13   : > { %v391_v0 = vld [vmem:[%s1624_s3] sm:$0x3]  ;;  %vm457_vm0 = vcmask 1041408   ;;  %s1638_s25 = smov (!%p344_p10, %s1043_s25), 31  ;;  %vm432_vm1 = vcmask 31744   ;;  %vm556_vm2 = vcmask 130048   ;;  %p1299_p0 = scmp.lt.s32.totalorder %s1293_s24, %s1630_s9 }
  0x14   : > { %v1208_v1 = vld [vmem:[%s1623_s2] sm:$0xff]  ;;  %v459_v2 = vsel %vm457_vm0, %v391_v0, 0  ;;  %s1044_s26 = sshll.u32 %s1638_s25, 2  ;;  %v1224_v13 = vld [vmem:[%s1626_s5 + $0x38] sm:$0xff]  ;;  %v1223_v16 = vld [vmem:[%s1626_s5 + $0x30] sm:$0xff]  ;;  %s1294_s13 = scalar_lea.hbm %s1293_s24, 128 }
  0x15   : > { %468 = vmatpush.bf16.msra.mxu0 %v459_v2  ;;  %588 = vmatpush.bf16.msra.mxu1 %v1208_v1  ;;  %s1452_s29 = scalar_lea.vmem %s1622_s1, %s1044_s26  ;;  %s1457_s17 = scalar_lea.vmem %s1621_s0, %s1044_s26  ;;  %v1222_v17 = vld [vmem:[%s1626_s5 + $0x28] sm:$0xff]  ;;  %v1221_v18 = vld [vmem:[%s1626_s5 + $0x20] sm:$0xff]  ;;  %v1220_v21 = vld [vmem:[%s1626_s5 + $0x18] sm:$0xff] }
  0x16   : > { %v1209_v3 = vld [vmem:[%s1452_s29] sm:$0xff]  ;;  %v1210_v5 = vld [vmem:[%s1452_s29 + $0x8] sm:$0xff]  ;;  %v1211_v7 = vld [vmem:[%s1452_s29 + $0x10] sm:$0xff]  ;;  %742 = vmatpush.bf16.msra.mxu2 %v1224_v13  ;;  %p1295_p11 = scmp.ne.s32.totalorder %s1293_s24, %s1294_s13  ;;  %s1298_s28 = scalar_lea.hbm %s1630_s9, 256 }
  0x17   : > { %v1200_v4 = vld [vmem:[%s1457_s17] sm:$0xff]  ;;  %v1201_v6 = vld [vmem:[%s1457_s17 + $0x8] sm:$0xff]  ;;  %v1202_v8 = vld [vmem:[%s1457_s17 + $0x10] sm:$0xff]  ;;  %p1300_p1 = scmp.lt.s32.totalorder %s1298_s28, %s1294_s13 }
  0x18   : > { %1079 = vmatmul.msk.bf16.vlgmr.msra.gmra.mxu0 %vm432_vm1, %v1209_v3  ;;  %1123 = vmatmul.msk.bf16.vlgmr.msra.gmra.mxu1 %vm556_vm2, %v1200_v4  ;;  %v1212_v9 = vld [vmem:[%s1452_s29 + $0x18] sm:$0xff]  ;;  %v1213_v11 = vld [vmem:[%s1452_s29 + $0x20] sm:$0xff]  ;;  %v1214_v14 = vld [vmem:[%s1452_s29 + $0x28] sm:$0xff]  ;;  %p1296_p12 = pnand %p1295_p11, %p1432_p5 }
  0x19   : > { %v1203_v10 = vld [vmem:[%s1457_s17 + $0x18] sm:$0xff]  ;;  %v1204_v12 = vld [vmem:[%s1457_s17 + $0x20] sm:$0xff]  ;;  %v1205_v15 = vld [vmem:[%s1457_s17 + $0x28] sm:$0xff]  ;;  %p1301_p2 = por %p1300_p1, %p1299_p0 }
  0x1a   : > { %743 = vmatpush.bf16.msra.mxu2 %v1223_v16  ;;  %v1215_v19 = vld [vmem:[%s1452_s29 + $0x30] sm:$0xff]  ;;  %v1218_v23 = vld [vmem:[%s1626_s5 + $0x8] sm:$0xff]  ;;  %v1217_v24 = vld [vmem:[%s1626_s5] sm:$0xff]  ;;  %p1297_p13 = pneg %p1296_p12 }
  0x1b   : > { %v1206_v20 = vld [vmem:[%s1457_s17 + $0x30] sm:$0xff]  ;;  %v1216_v25 = vld [vmem:[%s1452_s29 + $0x38] sm:$0xff]  ;;  %v1518_v30 = vld [vmem:[%s1625_s4] ss:$0 sm:$0xff] }
  0x1c   : > { %v1219_v22 = vld [vmem:[%s1626_s5 + $0x10] sm:$0xff]  ;;  %v1207_v26 = vld [vmem:[%s1457_s17 + $0x38] sm:$0xff]  ;;  %p1302_p3 = pnand %p1301_p2, %p1297_p13 }
  0x1e   : > { %744 = vmatpush.bf16.msra.mxu2 %v1222_v17 }
  0x22   : > { %745 = vmatpush.bf16.msra.mxu2 %v1221_v18 }
  0x26   : > { %746 = vmatpush.bf16.msra.mxu2 %v1220_v21 }
  0x28   : > { %1080 = vmatmul.msk.bf16.gmra.mxu0 %vm432_vm1, %v1210_v5  ;;  %1124 = vmatmul.msk.bf16.gmra.mxu1 %vm556_vm2, %v1201_v6 }
  0x2a   : > { %747 = vmatpush.bf16.msra.mxu2 %v1219_v22 }
  0x2e   : > { %748 = vmatpush.bf16.msra.mxu2 %v1218_v23 }
  0x32   : > { %749 = vmatpush.bf16.msra.mxu2 %v1217_v24 }
  0x38   : > { %1081 = vmatmul.msk.bf16.gmra.mxu0 %vm432_vm1, %v1211_v7  ;;  %1125 = vmatmul.msk.bf16.gmra.mxu1 %vm556_vm2, %v1202_v8 }
  0x48   : > { %1082 = vmatmul.msk.bf16.gmra.mxu0 %vm432_vm1, %v1212_v9  ;;  %1126 = vmatmul.msk.bf16.gmra.mxu1 %vm556_vm2, %v1203_v10 }
  0x58   : > { %1083 = vmatmul.msk.bf16.gmra.mxu0 %vm432_vm1, %v1213_v11  ;;  %1127 = vmatmul.msk.bf16.gmra.mxu1 %vm556_vm2, %v1204_v12 }
  0x68   : > { %1084 = vmatmul.msk.bf16.gmra.mxu0 %vm432_vm1, %v1214_v14  ;;  %1128 = vmatmul.msk.bf16.gmra.mxu1 %vm556_vm2, %v1205_v15 }
  0x78   : > { %1085 = vmatmul.msk.bf16.gmra.mxu0 %vm432_vm1, %v1215_v19  ;;  %1129 = vmatmul.msk.bf16.gmra.mxu1 %vm556_vm2, %v1206_v20 }
  0x88   : > { %1086 = vmatmul.msk.bf16.gmra.mxu0 %vm432_vm1, %v1216_v25  ;;  %1130 = vmatmul.msk.bf16.gmra.mxu1 %vm556_vm2, %v1207_v26 }
  0x95   : > { %v470_v27 = vpop.f32.mrf.mxu0  ;;  %v590_v28 = vpop.f32.mrf.mxu1 }
  0x96   : > { %v591_v29 = vadd.f32 %v590_v28, %v470_v27 }
  0x98   : > { %v634_v33 = vadd.f32 %v1518_v30, %v591_v29 }
  0x9a   : > { %v650_v36 = vmax.f32 %v634_v33, 0.0  ;;  %v1232_v33 = vld [vmem:[%s1628_s7 + $0x38] sm:$0xff] }
  0x9b   : > { %883 = vmatpush.bf16.msra.mxu3 %v1232_v33 }
  0x9d   : > { %v472_v31 = vpop.f32.mrf.mxu0  ;;  %v592_v32 = vpop.f32.mrf.mxu1 }
  0x9e   : > { %v593_v34 = vadd.f32 %v592_v32, %v472_v31 }
  0xa0   : > { %v635_v35 = vadd.f32 %v1518_v30, %v593_v34  ;;  %v1231_v34 = vld [vmem:[%s1628_s7 + $0x30] sm:$0xff] }
  0xa1   : > { %884 = vmatpush.bf16.msra.mxu3 %v1231_v34 }
  0xa2   : > { %v651_v37 = vmax.f32 %v635_v35, 0.0 }
  0xa4   : > { %v666_v38 = vpack.c.bf16 %v651_v37, %v650_v36  ;;  %v1230_v36 = vld [vmem:[%s1628_s7 + $0x28] sm:$0xff] }
  0xa5   : > { %v475_v39 = vpop.f32.mrf.mxu0  ;;  %v595_v40 = vpop.f32.mrf.mxu1  ;;  %885 = vmatpush.bf16.msra.mxu3 %v1230_v36 }
  0xa6   : > { %750 = vmatmul.bf16.vlgmr.msra.gmra.mxu2 %v666_v38  ;;  %v596_v41 = vadd.f32 %v595_v40, %v475_v39 }
  0xa8   : > { %v636_v44 = vadd.f32 %v1518_v30, %v596_v41 }
  0xaa   : > { %v652_v47 = vmax.f32 %v636_v44, 0.0 }
  0xad   : > { %v477_v42 = vpop.f32.mrf.mxu0  ;;  %v597_v43 = vpop.f32.mrf.mxu1 }
  0xae   : > { %v598_v45 = vadd.f32 %v597_v43, %v477_v42  ;;  %v1229_v42 = vld [vmem:[%s1628_s7 + $0x20] sm:$0xff] }
  0xaf   : > { %886 = vmatpush.bf16.msra.mxu3 %v1229_v42 }
  0xb0   : > { %v637_v46 = vadd.f32 %v1518_v30, %v598_v45 }
  0xb2   : > { %v653_v48 = vmax.f32 %v637_v46, 0.0 }
  0xb4   : > { %v667_v49 = vpack.c.bf16 %v653_v48, %v652_v47  ;;  %v1228_v48 = vld [vmem:[%s1628_s7 + $0x18] sm:$0xff] }
  0xb5   : > { %v480_v50 = vpop.f32.mrf.mxu0  ;;  %v600_v51 = vpop.f32.mrf.mxu1  ;;  %887 = vmatpush.bf16.msra.mxu3 %v1228_v48 }
  0xb6   : > { %755 = vmatmul.bf16.gmra.mxu2 %v667_v49  ;;  %v601_v52 = vadd.f32 %v600_v51, %v480_v50  ;;  %v1227_v50 = vld [vmem:[%s1628_s7 + $0x10] sm:$0xff] }
  0xb8   : > { %v638_v55 = vadd.f32 %v1518_v30, %v601_v52 }
  0xb9   : > { %888 = vmatpush.bf16.msra.mxu3 %v1227_v50 }
  0xba   : > { %v654_v58 = vmax.f32 %v638_v55, 0.0  ;;  %v1226_v55 = vld [vmem:[%s1628_s7 + $0x8] sm:$0xff] }
  0xbd   : > { %v482_v53 = vpop.f32.mrf.mxu0  ;;  %v602_v54 = vpop.f32.mrf.mxu1  ;;  %889 = vmatpush.bf16.msra.mxu3 %v1226_v55 }
  0xbe   : > { %v603_v56 = vadd.f32 %v602_v54, %v482_v53 }
  0xc0   : > { %v639_v57 = vadd.f32 %v1518_v30, %v603_v56 }
  0xc2   : > { %v655_v59 = vmax.f32 %v639_v57, 0.0 }
  0xc4   : > { %v668_v60 = vpack.c.bf16 %v655_v59, %v654_v58  ;;  %v1225_v59 = vld [vmem:[%s1628_s7] sm:$0xff] }
  0xc5   : > { %v485_v61 = vpop.f32.mrf.mxu0  ;;  %v605_v62 = vpop.f32.mrf.mxu1  ;;  %890 = vmatpush.bf16.msra.mxu3 %v1225_v59 }
  0xc6   : > { %760 = vmatmul.bf16.gmra.mxu2 %v668_v60  ;;  %v606_v63 = vadd.f32 %v605_v62, %v485_v61  ;;  %v1276_v62 = vld [vmem:[%s1627_s6] ss:$0 sm:$0xff] }
  0xc8   : > { %v640_v2 = vadd.f32 %v1518_v30, %v606_v63 }
  0xca   : > { %v656_v5 = vmax.f32 %v640_v2, 0.0 }
  0xcd   : > { %v487_v0 = vpop.f32.mrf.mxu0  ;;  %v607_v1 = vpop.f32.mrf.mxu1 }
  0xce   : > { %v608_v3 = vadd.f32 %v607_v1, %v487_v0 }
  0xd0   : > { %v641_v4 = vadd.f32 %v1518_v30, %v608_v3 }
  0xd2   : > { %v657_v6 = vmax.f32 %v641_v4, 0.0 }
  0xd4   : > { %v669_v7 = vpack.c.bf16 %v657_v6, %v656_v5 }
  0xd5   : > { %v490_v8 = vpop.f32.mrf.mxu0  ;;  %v610_v9 = vpop.f32.mrf.mxu1 }
  0xd6   : > { %765 = vmatmul.bf16.gmra.mxu2 %v669_v7  ;;  %v611_v10 = vadd.f32 %v610_v9, %v490_v8 }
  0xd8   : > { %v642_v13 = vadd.f32 %v1518_v30, %v611_v10 }
  0xda   : > { %v658_v16 = vmax.f32 %v642_v13, 0.0 }
  0xdd   : > { %v492_v11 = vpop.f32.mrf.mxu0  ;;  %v612_v12 = vpop.f32.mrf.mxu1 }
  0xde   : > { %v613_v14 = vadd.f32 %v612_v12, %v492_v11 }
  0xe0   : > { %v643_v15 = vadd.f32 %v1518_v30, %v613_v14 }
  0xe2   : > { %v659_v17 = vmax.f32 %v643_v15, 0.0 }
  0xe4   : > { %v670_v18 = vpack.c.bf16 %v659_v17, %v658_v16 }
  0xe5   : > { %v495_v19 = vpop.f32.mrf.mxu0  ;;  %v615_v20 = vpop.f32.mrf.mxu1 }
  0xe6   : > { %770 = vmatmul.bf16.gmra.mxu2 %v670_v18  ;;  %v616_v21 = vadd.f32 %v615_v20, %v495_v19 }
  0xe8   : > { %v644_v24 = vadd.f32 %v1518_v30, %v616_v21 }
  0xea   : > { %v660_v27 = vmax.f32 %v644_v24, 0.0 }
  0xed   : > { %v497_v22 = vpop.f32.mrf.mxu0  ;;  %v617_v23 = vpop.f32.mrf.mxu1 }
  0xee   : > { %v618_v25 = vadd.f32 %v617_v23, %v497_v22 }
  0xf0   : > { %v645_v26 = vadd.f32 %v1518_v30, %v618_v25 }
  0xf2   : > { %v661_v28 = vmax.f32 %v645_v26, 0.0 }
  0xf4   : > { %v671_v29 = vpack.c.bf16 %v661_v28, %v660_v27 }
  0xf5   : > { %v500_v31 = vpop.f32.mrf.mxu0  ;;  %v620_v32 = vpop.f32.mrf.mxu1 }
  0xf6   : > { %775 = vmatmul.bf16.gmra.mxu2 %v671_v29  ;;  %v621_v35 = vadd.f32 %v620_v32, %v500_v31 }
  0xf8   : > { %v646_v39 = vadd.f32 %v1518_v30, %v621_v35 }
  0xfa   : > { %v662_v43 = vmax.f32 %v646_v39, 0.0 }
  0xfd   : > { %v502_v37 = vpop.f32.mrf.mxu0  ;;  %v622_v38 = vpop.f32.mrf.mxu1 }
  0xfe   : > { %v623_v40 = vadd.f32 %v622_v38, %v502_v37 }
 0x100   : > { %v647_v41 = vadd.f32 %v1518_v30, %v623_v40 }
 0x102   : > { %v663_v44 = vmax.f32 %v647_v41, 0.0 }
 0x104   : > { %v672_v45 = vpack.c.bf16 %v663_v44, %v662_v43 }
 0x105   : > { %v505_v46 = vpop.f32.mrf.mxu0  ;;  %v625_v47 = vpop.f32.mrf.mxu1 }
 0x106   : > { %780 = vmatmul.bf16.gmra.mxu2 %v672_v45  ;;  %v626_v49 = vadd.f32 %v625_v47, %v505_v46 }
 0x108   : > { %v648_v53 = vadd.f32 %v1518_v30, %v626_v49 }
 0x10a   : > { %v664_v57 = vmax.f32 %v648_v53, 0.0 }
 0x10d   : > { %v507_v51 = vpop.f32.mrf.mxu0  ;;  %v627_v52 = vpop.f32.mrf.mxu1 }
 0x10e   : > { %v628_v54 = vadd.f32 %v627_v52, %v507_v51 }
 0x110   : > { %v649_v56 = vadd.f32 %v1518_v30, %v628_v54  ;;  %v1277_v54 = vld [vmem:[%s1629_s8] ss:$0 sm:$0xff] }
 0x112   : > { %v665_v58 = vmax.f32 %v649_v56, 0.0 }
 0x114   : > { %v673_v60 = vpack.c.bf16 %v665_v58, %v664_v57 }
 0x116   : > { %785 = vmatmul.bf16.gmra.mxu2 %v673_v60 }
 0x129   : > { %v751_v61 = vpop.f32.mrf.mxu2 }
 0x12a   : > { %v752_v63 = vadd.f32 %v1276_v62, %v751_v61 }
 0x12c   : > { %v791_v2 = vmax.f32 %v752_v63, 0.0 }
 0x131   : > { %v753_v0 = vpop.f32.mrf.mxu2 }
 0x132   : > { %v754_v1 = vadd.f32 %v1276_v62, %v753_v0 }
 0x134   : > { %v792_v30 = vmax.f32 %v754_v1, 0.0 }
 0x136   : > { %v807_v3 = vpack.c.bf16 %v792_v30, %v791_v2 }
 0x138   : > { %891 = vmatmul.bf16.vlgmr.msra.gmra.mxu3 %v807_v3 }
 0x139   : > { %v756_v4 = vpop.f32.mrf.mxu2 }
 0x13a   : > { %v757_v5 = vadd.f32 %v1276_v62, %v756_v4 }
 0x13c   : > { %v793_v8 = vmax.f32 %v757_v5, 0.0 }
 0x141   : > { %v758_v6 = vpop.f32.mrf.mxu2 }
 0x142   : > { %v759_v7 = vadd.f32 %v1276_v62, %v758_v6 }
 0x144   : > { %v794_v9 = vmax.f32 %v759_v7, 0.0 }
 0x146   : > { %v808_v10 = vpack.c.bf16 %v794_v9, %v793_v8 }
 0x148   : > { %896 = vmatmul.bf16.gmra.mxu3 %v808_v10 }
 0x149   : > { %v761_v11 = vpop.f32.mrf.mxu2 }
 0x14a   : > { %v762_v12 = vadd.f32 %v1276_v62, %v761_v11 }
 0x14c   : > { %v795_v15 = vmax.f32 %v762_v12, 0.0 }
 0x151   : > { %v763_v13 = vpop.f32.mrf.mxu2 }
 0x152   : > { %v764_v14 = vadd.f32 %v1276_v62, %v763_v13 }
 0x154   : > { %v796_v16 = vmax.f32 %v764_v14, 0.0 }
 0x156   : > { %v809_v17 = vpack.c.bf16 %v796_v16, %v795_v15 }
 0x158   : > { %901 = vmatmul.bf16.gmra.mxu3 %v809_v17 }
 0x159   : > { %v766_v18 = vpop.f32.mrf.mxu2 }
 0x15a   : > { %v767_v19 = vadd.f32 %v1276_v62, %v766_v18 }
 0x15c   : > { %v797_v22 = vmax.f32 %v767_v19, 0.0 }
 0x161   : > { %v768_v20 = vpop.f32.mrf.mxu2 }
 0x162   : > { %v769_v21 = vadd.f32 %v1276_v62, %v768_v20 }
 0x164   : > { %v798_v23 = vmax.f32 %v769_v21, 0.0 }
 0x166   : > { %v810_v24 = vpack.c.bf16 %v798_v23, %v797_v22 }
 0x168   : > { %906 = vmatmul.bf16.gmra.mxu3 %v810_v24 }
 0x169   : > { %v771_v25 = vpop.f32.mrf.mxu2 }
 0x16a   : > { %v772_v26 = vadd.f32 %v1276_v62, %v771_v25 }
 0x16c   : > { %v799_v29 = vmax.f32 %v772_v26, 0.0 }
 0x171   : > { %v773_v27 = vpop.f32.mrf.mxu2 }
 0x172   : > { %v774_v28 = vadd.f32 %v1276_v62, %v773_v27 }
 0x174   : > { %v800_v31 = vmax.f32 %v774_v28, 0.0 }
 0x176   : > { %v811_v32 = vpack.c.bf16 %v800_v31, %v799_v29 }
 0x178   : > { %911 = vmatmul.bf16.gmra.mxu3 %v811_v32 }
 0x179   : > { %v776_v33 = vpop.f32.mrf.mxu2 }
 0x17a   : > { %v777_v34 = vadd.f32 %v1276_v62, %v776_v33 }
 0x17c   : > { %v801_v37 = vmax.f32 %v777_v34, 0.0 }
 0x181   : > { %v778_v35 = vpop.f32.mrf.mxu2 }
 0x182   : > { %v779_v36 = vadd.f32 %v1276_v62, %v778_v35 }
 0x184   : > { %v802_v38 = vmax.f32 %v779_v36, 0.0 }
 0x186   : > { %v812_v39 = vpack.c.bf16 %v802_v38, %v801_v37 }
 0x188   : > { %916 = vmatmul.bf16.gmra.mxu3 %v812_v39 }
 0x189   : > { %v781_v40 = vpop.f32.mrf.mxu2 }
 0x18a   : > { %v782_v41 = vadd.f32 %v1276_v62, %v781_v40 }
 0x18c   : > { %v803_v44 = vmax.f32 %v782_v41, 0.0 }
 0x191   : > { %v783_v42 = vpop.f32.mrf.mxu2 }
 0x192   : > { %v784_v43 = vadd.f32 %v1276_v62, %v783_v42 }
 0x194   : > { %v804_v45 = vmax.f32 %v784_v43, 0.0 }
 0x196   : > { %v813_v46 = vpack.c.bf16 %v804_v45, %v803_v44 }
 0x198   : > { %921 = vmatmul.bf16.gmra.mxu3 %v813_v46 }
 0x199   : > { %v786_v47 = vpop.f32.mrf.mxu2 }
 0x19a   : > { %v787_v48 = vadd.f32 %v1276_v62, %v786_v47 }
 0x19c   : > { %v805_v51 = vmax.f32 %v787_v48, 0.0 }
 0x1a1   : > { %v788_v49 = vpop.f32.mrf.mxu2 }
 0x1a2   : > { %v789_v50 = vadd.f32 %v1276_v62, %v788_v49 }
 0x1a4   : > { %v806_v52 = vmax.f32 %v789_v50, 0.0 }
 0x1a6   : > { %v814_v53 = vpack.c.bf16 %v806_v52, %v805_v51 }
 0x1a8   : > { %926 = vmatmul.bf16.gmra.mxu3 %v814_v53 }
 0x1bb   : > { %v892_v55 = vpop.f32.mrf.mxu3 }
 0x1bc   : > { %v893_v56 = vadd.f32 %v1277_v54, %v892_v55 }
 0x1be   : > { %932 = vst [vmem:[%s1569_s27] sm:$0xff] %v893_v56 }
 0x1c3   : > { %v894_v57 = vpop.f32.mrf.mxu3 }
 0x1c4   : > { %v895_v58 = vadd.f32 %v1277_v54, %v894_v57 }
 0x1c6   : > { %933 = vst [vmem:[%s1569_s27 + $0x8] sm:$0xff] %v895_v58 }
 0x1cb   : > { %v897_v59 = vpop.f32.mrf.mxu3 }
 0x1cc   : > { %v898_v60 = vadd.f32 %v1277_v54, %v897_v59 }
 0x1ce   : > { %934 = vst [vmem:[%s1569_s27 + $0x10] sm:$0xff] %v898_v60 }
 0x1d3   : > { %v899_v61 = vpop.f32.mrf.mxu3 }
 0x1d4   : > { %v900_v62 = vadd.f32 %v1277_v54, %v899_v61 }
 0x1d6   : > { %935 = vst [vmem:[%s1569_s27 + $0x18] sm:$0xff] %v900_v62 }
 0x1db   : > { %v902_v63 = vpop.f32.mrf.mxu3 }
 0x1dc   : > { %v903_v0 = vadd.f32 %v1277_v54, %v902_v63 }
 0x1de   : > { %936 = vst [vmem:[%s1569_s27 + $0x20] sm:$0xff] %v903_v0 }
 0x1e3   : > { %v904_v1 = vpop.f32.mrf.mxu3 }
 0x1e4   : > { %v905_v2 = vadd.f32 %v1277_v54, %v904_v1 }
 0x1e6   : > { %937 = vst [vmem:[%s1569_s27 + $0x28] sm:$0xff] %v905_v2 }
 0x1eb   : > { %v907_v30 = vpop.f32.mrf.mxu3 }
 0x1ec   : > { %v908_v3 = vadd.f32 %v1277_v54, %v907_v30 }
 0x1ee   : > { %938 = vst [vmem:[%s1569_s27 + $0x30] sm:$0xff] %v908_v3 }
 0x1f3   : > { %v909_v4 = vpop.f32.mrf.mxu3 }
 0x1f4   : > { %v910_v5 = vadd.f32 %v1277_v54, %v909_v4 }
 0x1f6   : > { %939 = vst [vmem:[%s1569_s27 + $0x38] sm:$0xff] %v910_v5 }
 0x1fb   : > { %v912_v6 = vpop.f32.mrf.mxu3 }
 0x1fc   : > { %v913_v7 = vadd.f32 %v1277_v54, %v912_v6 }
 0x1fe   : > { %940 = vst [vmem:[%s1569_s27 + $0x40] sm:$0xff] %v913_v7 }
 0x203   : > { %v914_v8 = vpop.f32.mrf.mxu3 }
 0x204   : > { %v915_v9 = vadd.f32 %v1277_v54, %v914_v8 }
 0x206   : > { %941 = vst [vmem:[%s1569_s27 + $0x48] sm:$0xff] %v915_v9 }
 0x20b   : > { %v917_v10 = vpop.f32.mrf.mxu3 }
 0x20c   : > { %v918_v11 = vadd.f32 %v1277_v54, %v917_v10 }
 0x20e   : > { %942 = vst [vmem:[%s1569_s27 + $0x50] sm:$0xff] %v918_v11 }
 0x213   : > { %v919_v12 = vpop.f32.mrf.mxu3 }
 0x214   : > { %v920_v13 = vadd.f32 %v1277_v54, %v919_v12 }
 0x216   : > { %943 = vst [vmem:[%s1569_s27 + $0x58] sm:$0xff] %v920_v13 }
 0x21b   : > { %v922_v14 = vpop.f32.mrf.mxu3 }
 0x21c   : > { %v923_v15 = vadd.f32 %v1277_v54, %v922_v14 }
 0x21e   : > { %944 = vst [vmem:[%s1569_s27 + $0x60] sm:$0xff] %v923_v15 }
 0x223   : > { %v924_v16 = vpop.f32.mrf.mxu3 }
 0x224   : > { %v925_v17 = vadd.f32 %v1277_v54, %v924_v16 }
 0x226   : > { %945 = vst [vmem:[%s1569_s27 + $0x68] sm:$0xff] %v925_v17 }
 0x22b   : > { %v927_v18 = vpop.f32.mrf.mxu3 }
 0x22c   : > { %v928_v19 = vadd.f32 %v1277_v54, %v927_v18 }
 0x22e   : > { %946 = vst [vmem:[%s1569_s27 + $0x70] sm:$0xff] %v928_v19 }
 0x233   : > { %v929_v20 = vpop.f32.mrf.mxu3 }
 0x234   : > { %v930_v21 = vadd.f32 %v1277_v54, %v929_v20 }
 0x236   : > { %947 = vst [vmem:[%s1569_s27 + $0x78] sm:$0xff] %v930_v21 }
 0x237   : > { %1305 = shalt.err (!%p1302_p3)
}
 0x238   : > { %s1342_s23 = smov 128   ;;  %s1343_s27 = smov 8  }
 0x239   : > { %1234 = dma.vmem_to_hbm [thread:$0]  (%p1432_p5), %s962_s16, 2048, %s964_s21, %s949_s22, %s1342_s23, %s1342_s23, %s1343_s27  }
 0x23a PF: > { %p1240_p4 = scmp.ge.s32.totalorder %s1340_s12, 2  ;;  %s978_s14 = sand.u32 1, %s1328_s30  }
 0x23b   : > { %s979_s25 = scalar_lea.sflag [#allocation3], %s978_s14 }
 0x23c   : > { %p1237_p7 = pnand %p1240_p4, %p1436_p6 }
 0x23e   : > { %p1238_p8 = pneg %p1237_p7 }
 0x240   : > { %1323 = dma.done.wait (%p1238_p8), %s979_s25, 2048  }
 0x241   : > { %1325 = vsyncadd (%p1238_p8), %s979_s25, 4294965248  ;;  %p19_p9 = scmp.ge.s32.totalorder %s1419_s15, 4   ;;  %s1633_s30 = smov %s1332_s10 }
 0x242   : > { %s1634_s10 = smov %s1336_s11  ;;  %s1635_s11 = smov %s1430_s18 }
 0x243   : > { %s1636_s12 = smov %s1419_s15  ;;  %21 = sbr.rel (!%p19_p9) target bundleno = 3 (0x3), region = 94 }
 0x248   :  { %985 = vsyncpa [#allocation3], 1 }
 0x249   :  { %987 = vsyncpa [#allocation3 + $0x1], 1 }

</bundles_post_ra>
